<compile_context>
chip_gen: v7x
topology: tpu7x:2x2x1
jax: 0.10.0
libtpu: 0.0.40
codegen_flags: <defaults>
</compile_context>

<pallas_src>
import functools
import math

import jax
import jax.numpy as jnp
from jax import lax
from jax.experimental import pallas as pl
from jax.experimental.pallas import tpu as pltpu


# ---------------------------------------------------------------------------
# Lanczos (g=7, n=9) lgamma in rational-polynomial form.
# ---------------------------------------------------------------------------
_LANCZOS_G = 7.0
_LANCZOS_COEF = (
    0.99999999999980993,
    676.5203681218851,
    -1259.1392167224028,
    771.32342877765313,
    -176.61502916214059,
    12.507343278686905,
    -0.13857109526572012,
    9.9843695780195716e-6,
    1.5056327351493116e-7,
)
_HALF_LOG_2PI = 0.5 * math.log(2.0 * math.pi)


def _poly_mul(a, b):
    out = [0.0] * (len(a) + len(b) - 1)
    for i, ai in enumerate(a):
        for j, bj in enumerate(b):
            out[i + j] += ai * bj
    return out


def _lanczos_rational_coeffs():
    """A(z) = c0 + sum_i c_i/(w+i)  ==  P(w)/Q(w),  w = z-1.

    Q(w) = prod_{i=1..8}(w+i);  P(w) = c0*Q(w) + sum_i c_i * Q(w)/(w+i).
    Coefficients are built in float64 and returned in descending (Horner) order.
    """
    q = [1.0]
    for i in range(1, 9):
        q = _poly_mul(q, [float(i), 1.0])           # ascending coeffs of (w+i)
    p = [_LANCZOS_COEF[0] * c for c in q]
    for i in range(1, 9):
        qi = [1.0]
        for j in range(1, 9):
            if j != i:
                qi = _poly_mul(qi, [float(j), 1.0])
        for k, c in enumerate(qi):
            p[k] += _LANCZOS_COEF[i] * c
    return tuple(reversed(p)), tuple(reversed(q))


_LANCZOS_P_DESC, _LANCZOS_Q_DESC = _lanczos_rational_coeffs()


def _horner(w, coeffs_desc):
    acc = jnp.full_like(w, coeffs_desc[0])
    for c in coeffs_desc[1:]:
        acc = acc * w + c                            # VPU FMAs
    return acc


def _lgamma_pos(z):
    """log(Gamma(z)) for z > 0 (our arguments: x+theta, theta, x+1 are all > 0).

    Rational Lanczos: 1 divide + 2 logs on the EUP instead of 8 divides + 2 logs.
    Q(w) ~ w^8, so valid up to z ~ 5e4 in float32 (plenty for count data).
    """
    w = z - 1.0
    t = w + (_LANCZOS_G + 0.5)
    num = _horner(w, _LANCZOS_P_DESC)
    den = _horner(w, _LANCZOS_Q_DESC)
    return _HALF_LOG_2PI + (w + 0.5) * jnp.log(t) - t + jnp.log(num / den)


# ---------------------------------------------------------------------------
# Kernel
# ---------------------------------------------------------------------------
def _nb_kernel(x_ref, mu_ref, theta_ref, out_ref, *,
               eps, block_rows, valid_rows, need_mask):
    i = pl.program_id(0)

    x = x_ref[...].astype(jnp.float32)              # (tm, D)
    mu = mu_ref[...].astype(jnp.float32)            # (tm, D)
    theta = theta_ref[...].astype(jnp.float32)      # (1, D) -> broadcast

    log_theta_mu_eps = jnp.log(theta + mu + eps)
    # Only the x/mu-dependent part of the per-element NB log-likelihood;
    # the theta-only constant  theta*log(theta+eps) - lgamma(theta)  is added
    # exactly once (scaled by the number of valid rows) on grid step 0 below.
    res = (x * (jnp.log(mu + eps) - log_theta_mu_eps)
           - theta * log_theta_mu_eps
           + _lgamma_pos(x + theta)
           - _lgamma_pos(x + 1.0))

    if need_mask:  # static flag; only present when the batch was padded
        row = i * block_rows + lax.broadcasted_iota(jnp.int32, (block_rows, 1), 0)
        res = jnp.where(row < valid_rows, res, 0.0)

    # Reduce block_rows -> 8 rows with pure VPU adds (no per-step XLU reduce);
    # the final lane/sublane reduction over the tiny partials is in the wrapper.
    part = res[0:8, :]
    for k in range(1, block_rows // 8):
        part = part + res[k * 8:(k + 1) * 8, :]
    out_ref[...] = part

    @pl.when(i == 0)
    def _():
        # Hoisted theta-only term, evaluated once for the entire grid. Spread
        # its total contribution (valid_rows * c_theta) over the 8 output rows
        # of this tile's partial block (valid_rows / 8 is exact in binary).
        c_theta = theta * jnp.log(theta + eps) - _lgamma_pos(theta)   # (1, D)
        out_ref[...] = out_ref[...] + (valid_rows / 8.0) * c_theta


# ---------------------------------------------------------------------------
# Wrapper
# ---------------------------------------------------------------------------
def _round_up(v, m):
    return ((v + m - 1) // m) * m


def nb_loss(x, mu, theta, *, eps=1e-8, reduction="mean",
            max_block_rows=512, max_block_bytes=1 << 20):
    """NB.forward(x, mu, theta) -> scalar (matches the PyTorch module)."""
    if theta.ndim == 1:
        theta = theta.reshape(1, -1)
    B, D = x.shape
    assert mu.shape == (B, D) and theta.shape == (1, D)
    if reduction not in ("mean", "sum"):
        raise NotImplementedError(
            f"reduction method {reduction} is not implemented.")

    # Row tile: as large as the per-buffer budget allows (multiple of 8),
    # capped so 2 inputs x 2 buffers x tile + elementwise temporaries stay well
    # inside the scoped-VMEM limit on v5e/v6e/v7x.
    bytes_per_row = D * 4
    tm_cap = min(max_block_rows, max(8, (max_block_bytes // bytes_per_row) // 8 * 8))
    tm = min(tm_cap, _round_up(B, 8))
    b_pad = _round_up(B, tm)
    need_mask = b_pad != B
    if need_mask:
        pad = b_pad - B
        x = jnp.pad(x, ((0, pad), (0, 0)))
        mu = jnp.pad(mu, ((0, pad), (0, 0)))
    num_tiles = b_pad // tm

    kernel = functools.partial(_nb_kernel, eps=float(eps), block_rows=tm,
                               valid_rows=int(B), need_mask=need_mask)

    partials = pl.pallas_call(
        kernel,
        out_shape=jax.ShapeDtypeStruct((num_tiles * 8, D), jnp.float32),
        grid_spec=pltpu.PrefetchScalarGridSpec(
            num_scalar_prefetch=0,
            grid=(num_tiles,),
            in_specs=[
                pl.BlockSpec((tm, D), lambda i: (i, 0)),   # x
                pl.BlockSpec((tm, D), lambda i: (i, 0)),   # mu
                pl.BlockSpec((1, D), lambda i: (0, 0)),    # theta
            ],
            out_specs=pl.BlockSpec((8, D), lambda i: (i, 0)),
        ),
        compiler_params=pltpu.CompilerParams(
            dimension_semantics=("parallel",),             # megacore-friendly
            vmem_limit_bytes=32 * 1024 * 1024),
    )(x, mu, theta)

    total = jnp.sum(partials)                              # tiny wrapper reduce
    if reduction == "mean":
        return total / float(B * D)
    return total


# ---------------------------------------------------------------------------
# Pure-JAX reference (mirrors the PyTorch forward)
# ---------------------------------------------------------------------------
def _nb_loss_ref(x, mu, theta, eps=1e-8, reduction="mean"):
    if theta.ndim == 1:
        theta = theta.reshape(1, -1)
    log_theta_mu_eps = jnp.log(theta + mu + eps)
    res = (theta * (jnp.log(theta + eps) - log_theta_mu_eps)
           + x * (jnp.log(mu + eps) - log_theta_mu_eps)
           + jax.scipy.special.gammaln(x + theta)
           - jax.scipy.special.gammaln(theta)
           - jax.scipy.special.gammaln(x + 1.0))
    return jnp.mean(res) if reduction == "mean" else jnp.sum(res)


if __name__ == "__main__":
    key = jax.random.PRNGKey(0)
    kx, kmu, kth = jax.random.split(key, 3)

    B, D = 16, 128  # small shapes: batch x count-features (xdim)
    # Ground-truth counts (non-negative integers as floats).
    x = jnp.floor(jax.random.uniform(kx, (B, D), jnp.float32) * 10.0)
    # Predicted means (positive).
    mu = jax.random.uniform(kmu, (B, D), jnp.float32) * 5.0 + 0.1
    # theta: nn.Parameter(torch.randn(xdim)) in the model; made positive
    # deterministically so lgamma stays in its valid domain.
    theta = jnp.exp(jax.random.normal(kth, (D,), jnp.float32))

    out = jax.block_until_ready(nb_loss(x, mu, theta))
    ref = _nb_loss_ref(x, mu, theta)
    assert jnp.isfinite(out)
    assert jnp.allclose(out, ref, rtol=1e-3, atol=1e-3), (out, ref)

    # Ragged batch (exercises the padded/masked tail) + 'sum' reduction.
    B2 = 12
    out2 = jax.block_until_ready(nb_loss(x[:B2], mu[:B2], theta, reduction="sum"))
    ref2 = _nb_loss_ref(x[:B2], mu[:B2], theta, reduction="sum")
    assert jnp.isfinite(out2)
    assert jnp.allclose(out2, ref2, rtol=1e-3, atol=1e-3), (out2, ref2)

    print("KERNEL_OK")
</pallas_src>

<mosaic_0001>
module attributes {stable_mosaic.version = 11 : i64} {
  func.func @_nb_kernel(%arg0: i32, %arg1: memref<16x128xf32, #tpu.memory_space<vmem>>, %arg2: memref<16x128xf32, #tpu.memory_space<vmem>>, %arg3: memref<1x128xf32, #tpu.memory_space<vmem>>, %arg4: memref<8x128xf32, #tpu.memory_space<vmem>>) attributes {dimension_semantics = [#tpu.dimension_semantics<parallel>], iteration_bounds = array<i64: 1>, scalar_prefetch = 0 : i64, scratch_operands = 0 : i64, tpu.core_type = #tpu.core_type<tc>, window_params = [{transform_indices = @transform_0, window_bounds = array<i64: 16, 128>}, {transform_indices = @transform_1, window_bounds = array<i64: 16, 128>}, {pipeline_mode = #tpu.pipeline_mode<synchronous>, transform_indices = @transform_2, window_bounds = array<i64: 1, 128>}, {transform_indices = @transform_3, window_bounds = array<i64: 8, 128>}]} {
    %c0 = arith.constant 0 : index
    %c0_0 = arith.constant 0 : index
    %0 = vector.load %arg1[%c0, %c0_0] : memref<16x128xf32, #tpu.memory_space<vmem>>, vector<16x128xf32>
    %c0_1 = arith.constant 0 : index
    %c0_2 = arith.constant 0 : index
    %1 = vector.load %arg2[%c0_1, %c0_2] : memref<16x128xf32, #tpu.memory_space<vmem>>, vector<16x128xf32>
    %c0_3 = arith.constant 0 : index
    %c0_4 = arith.constant 0 : index
    %2 = vector.load %arg3[%c0_3, %c0_4] : memref<1x128xf32, #tpu.memory_space<vmem>>, vector<1x128xf32>
    %3 = vector.broadcast %2 : vector<1x128xf32> to vector<16x128xf32>
    %4 = arith.addf %3, %1 : vector<16x128xf32>
    %cst = arith.constant 9.99999993E-9 : f32
    %5 = vector.broadcast %cst : f32 to vector<16x128xf32>
    %6 = arith.addf %4, %5 : vector<16x128xf32>
    %7 = math.log %6 : vector<16x128xf32>
    %cst_5 = arith.constant 9.99999993E-9 : f32
    %8 = vector.broadcast %cst_5 : f32 to vector<16x128xf32>
    %9 = arith.addf %1, %8 : vector<16x128xf32>
    %10 = math.log %9 : vector<16x128xf32>
    %11 = arith.subf %10, %7 : vector<16x128xf32>
    %12 = arith.mulf %0, %11 : vector<16x128xf32>
    %13 = vector.broadcast %2 : vector<1x128xf32> to vector<16x128xf32>
    %14 = arith.mulf %13, %7 : vector<16x128xf32>
    %15 = arith.subf %12, %14 : vector<16x128xf32>
    %16 = vector.broadcast %2 : vector<1x128xf32> to vector<16x128xf32>
    %17 = arith.addf %0, %16 : vector<16x128xf32>
    %cst_6 = arith.constant 1.000000e+00 : f32
    %18 = vector.broadcast %cst_6 : f32 to vector<16x128xf32>
    %19 = arith.subf %17, %18 : vector<16x128xf32>
    %cst_7 = arith.constant 7.500000e+00 : f32
    %20 = vector.broadcast %cst_7 : f32 to vector<16x128xf32>
    %21 = arith.addf %19, %20 : vector<16x128xf32>
    %cst_8 = arith.constant 1.000000e+00 : f32
    %22 = vector.broadcast %cst_8 : f32 to vector<16x128xf32>
    %23 = arith.mulf %22, %19 : vector<16x128xf32>
    %cst_9 = arith.constant 60.4583321 : f32
    %24 = vector.broadcast %cst_9 : f32 to vector<16x128xf32>
    %25 = arith.addf %23, %24 : vector<16x128xf32>
    %26 = arith.mulf %25, %19 : vector<16x128xf32>
    %cst_10 = arith.constant 1599.04248 : f32
    %27 = vector.broadcast %cst_10 : f32 to vector<16x128xf32>
    %28 = arith.addf %26, %27 : vector<16x128xf32>
    %29 = arith.mulf %28, %19 : vector<16x128xf32>
    %cst_11 = arith.constant 24165.5098 : f32
    %30 = vector.broadcast %cst_11 : f32 to vector<16x128xf32>
    %31 = arith.addf %29, %30 : vector<16x128xf32>
    %32 = arith.mulf %31, %19 : vector<16x128xf32>
    %cst_12 = arith.constant 228235.219 : f32
    %33 = vector.broadcast %cst_12 : f32 to vector<16x128xf32>
    %34 = arith.addf %32, %33 : vector<16x128xf32>
    %35 = arith.mulf %34, %19 : vector<16x128xf32>
    %cst_13 = arith.constant 1379496.25 : f32
    %36 = vector.broadcast %cst_13 : f32 to vector<16x128xf32>
    %37 = arith.addf %35, %36 : vector<16x128xf32>
    %38 = arith.mulf %37, %19 : vector<16x128xf32>
    %cst_14 = arith.constant 0x4A9F05EA : f32
    %39 = vector.broadcast %cst_14 : f32 to vector<16x128xf32>
    %40 = arith.addf %38, %39 : vector<16x128xf32>
    %41 = arith.mulf %40, %19 : vector<16x128xf32>
    %cst_15 = arith.constant 0x4B2B9D51 : f32
    %42 = vector.broadcast %cst_15 : f32 to vector<16x128xf32>
    %43 = arith.addf %41, %42 : vector<16x128xf32>
    %44 = arith.mulf %43, %19 : vector<16x128xf32>
    %cst_16 = arith.constant 0x4B220ADA : f32
    %45 = vector.broadcast %cst_16 : f32 to vector<16x128xf32>
    %46 = arith.addf %44, %45 : vector<16x128xf32>
    %cst_17 = arith.constant 1.000000e+00 : f32
    %47 = vector.broadcast %cst_17 : f32 to vector<16x128xf32>
    %48 = arith.mulf %47, %19 : vector<16x128xf32>
    %cst_18 = arith.constant 3.600000e+01 : f32
    %49 = vector.broadcast %cst_18 : f32 to vector<16x128xf32>
    %50 = arith.addf %48, %49 : vector<16x128xf32>
    %51 = arith.mulf %50, %19 : vector<16x128xf32>
    %cst_19 = arith.constant 5.460000e+02 : f32
    %52 = vector.broadcast %cst_19 : f32 to vector<16x128xf32>
    %53 = arith.addf %51, %52 : vector<16x128xf32>
    %54 = arith.mulf %53, %19 : vector<16x128xf32>
    %cst_20 = arith.constant 4.536000e+03 : f32
    %55 = vector.broadcast %cst_20 : f32 to vector<16x128xf32>
    %56 = arith.addf %54, %55 : vector<16x128xf32>
    %57 = arith.mulf %56, %19 : vector<16x128xf32>
    %cst_21 = arith.constant 2.244900e+04 : f32
    %58 = vector.broadcast %cst_21 : f32 to vector<16x128xf32>
    %59 = arith.addf %57, %58 : vector<16x128xf32>
    %60 = arith.mulf %59, %19 : vector<16x128xf32>
    %cst_22 = arith.constant 6.728400e+04 : f32
    %61 = vector.broadcast %cst_22 : f32 to vector<16x128xf32>
    %62 = arith.addf %60, %61 : vector<16x128xf32>
    %63 = arith.mulf %62, %19 : vector<16x128xf32>
    %cst_23 = arith.constant 1.181240e+05 : f32
    %64 = vector.broadcast %cst_23 : f32 to vector<16x128xf32>
    %65 = arith.addf %63, %64 : vector<16x128xf32>
    %66 = arith.mulf %65, %19 : vector<16x128xf32>
    %cst_24 = arith.constant 1.095840e+05 : f32
    %67 = vector.broadcast %cst_24 : f32 to vector<16x128xf32>
    %68 = arith.addf %66, %67 : vector<16x128xf32>
    %69 = arith.mulf %68, %19 : vector<16x128xf32>
    %cst_25 = arith.constant 4.032000e+04 : f32
    %70 = vector.broadcast %cst_25 : f32 to vector<16x128xf32>
    %71 = arith.addf %69, %70 : vector<16x128xf32>
    %cst_26 = arith.constant 5.000000e-01 : f32
    %72 = vector.broadcast %cst_26 : f32 to vector<16x128xf32>
    %73 = arith.addf %19, %72 : vector<16x128xf32>
    %74 = math.log %21 : vector<16x128xf32>
    %75 = arith.mulf %73, %74 : vector<16x128xf32>
    %cst_27 = arith.constant 0.918938517 : f32
    %76 = vector.broadcast %cst_27 : f32 to vector<16x128xf32>
    %77 = arith.addf %76, %75 : vector<16x128xf32>
    %78 = arith.subf %77, %21 : vector<16x128xf32>
    %79 = arith.divf %46, %71 : vector<16x128xf32>
    %80 = math.log %79 : vector<16x128xf32>
    %81 = arith.addf %78, %80 : vector<16x128xf32>
    %82 = arith.addf %15, %81 : vector<16x128xf32>
    %cst_28 = arith.constant 1.000000e+00 : f32
    %83 = vector.broadcast %cst_28 : f32 to vector<16x128xf32>
    %84 = arith.addf %0, %83 : vector<16x128xf32>
    %cst_29 = arith.constant 1.000000e+00 : f32
    %85 = vector.broadcast %cst_29 : f32 to vector<16x128xf32>
    %86 = arith.subf %84, %85 : vector<16x128xf32>
    %cst_30 = arith.constant 7.500000e+00 : f32
    %87 = vector.broadcast %cst_30 : f32 to vector<16x128xf32>
    %88 = arith.addf %86, %87 : vector<16x128xf32>
    %cst_31 = arith.constant 1.000000e+00 : f32
    %89 = vector.broadcast %cst_31 : f32 to vector<16x128xf32>
    %90 = arith.mulf %89, %86 : vector<16x128xf32>
    %cst_32 = arith.constant 60.4583321 : f32
    %91 = vector.broadcast %cst_32 : f32 to vector<16x128xf32>
    %92 = arith.addf %90, %91 : vector<16x128xf32>
    %93 = arith.mulf %92, %86 : vector<16x128xf32>
    %cst_33 = arith.constant 1599.04248 : f32
    %94 = vector.broadcast %cst_33 : f32 to vector<16x128xf32>
    %95 = arith.addf %93, %94 : vector<16x128xf32>
    %96 = arith.mulf %95, %86 : vector<16x128xf32>
    %cst_34 = arith.constant 24165.5098 : f32
    %97 = vector.broadcast %cst_34 : f32 to vector<16x128xf32>
    %98 = arith.addf %96, %97 : vector<16x128xf32>
    %99 = arith.mulf %98, %86 : vector<16x128xf32>
    %cst_35 = arith.constant 228235.219 : f32
    %100 = vector.broadcast %cst_35 : f32 to vector<16x128xf32>
    %101 = arith.addf %99, %100 : vector<16x128xf32>
    %102 = arith.mulf %101, %86 : vector<16x128xf32>
    %cst_36 = arith.constant 1379496.25 : f32
    %103 = vector.broadcast %cst_36 : f32 to vector<16x128xf32>
    %104 = arith.addf %102, %103 : vector<16x128xf32>
    %105 = arith.mulf %104, %86 : vector<16x128xf32>
    %cst_37 = arith.constant 0x4A9F05EA : f32
    %106 = vector.broadcast %cst_37 : f32 to vector<16x128xf32>
    %107 = arith.addf %105, %106 : vector<16x128xf32>
    %108 = arith.mulf %107, %86 : vector<16x128xf32>
    %cst_38 = arith.constant 0x4B2B9D51 : f32
    %109 = vector.broadcast %cst_38 : f32 to vector<16x128xf32>
    %110 = arith.addf %108, %109 : vector<16x128xf32>
    %111 = arith.mulf %110, %86 : vector<16x128xf32>
    %cst_39 = arith.constant 0x4B220ADA : f32
    %112 = vector.broadcast %cst_39 : f32 to vector<16x128xf32>
    %113 = arith.addf %111, %112 : vector<16x128xf32>
    %cst_40 = arith.constant 1.000000e+00 : f32
    %114 = vector.broadcast %cst_40 : f32 to vector<16x128xf32>
    %115 = arith.mulf %114, %86 : vector<16x128xf32>
    %cst_41 = arith.constant 3.600000e+01 : f32
    %116 = vector.broadcast %cst_41 : f32 to vector<16x128xf32>
    %117 = arith.addf %115, %116 : vector<16x128xf32>
    %118 = arith.mulf %117, %86 : vector<16x128xf32>
    %cst_42 = arith.constant 5.460000e+02 : f32
    %119 = vector.broadcast %cst_42 : f32 to vector<16x128xf32>
    %120 = arith.addf %118, %119 : vector<16x128xf32>
    %121 = arith.mulf %120, %86 : vector<16x128xf32>
    %cst_43 = arith.constant 4.536000e+03 : f32
    %122 = vector.broadcast %cst_43 : f32 to vector<16x128xf32>
    %123 = arith.addf %121, %122 : vector<16x128xf32>
    %124 = arith.mulf %123, %86 : vector<16x128xf32>
    %cst_44 = arith.constant 2.244900e+04 : f32
    %125 = vector.broadcast %cst_44 : f32 to vector<16x128xf32>
    %126 = arith.addf %124, %125 : vector<16x128xf32>
    %127 = arith.mulf %126, %86 : vector<16x128xf32>
    %cst_45 = arith.constant 6.728400e+04 : f32
    %128 = vector.broadcast %cst_45 : f32 to vector<16x128xf32>
    %129 = arith.addf %127, %128 : vector<16x128xf32>
    %130 = arith.mulf %129, %86 : vector<16x128xf32>
    %cst_46 = arith.constant 1.181240e+05 : f32
    %131 = vector.broadcast %cst_46 : f32 to vector<16x128xf32>
    %132 = arith.addf %130, %131 : vector<16x128xf32>
    %133 = arith.mulf %132, %86 : vector<16x128xf32>
    %cst_47 = arith.constant 1.095840e+05 : f32
    %134 = vector.broadcast %cst_47 : f32 to vector<16x128xf32>
    %135 = arith.addf %133, %134 : vector<16x128xf32>
    %136 = arith.mulf %135, %86 : vector<16x128xf32>
    %cst_48 = arith.constant 4.032000e+04 : f32
    %137 = vector.broadcast %cst_48 : f32 to vector<16x128xf32>
    %138 = arith.addf %136, %137 : vector<16x128xf32>
    %cst_49 = arith.constant 5.000000e-01 : f32
    %139 = vector.broadcast %cst_49 : f32 to vector<16x128xf32>
    %140 = arith.addf %86, %139 : vector<16x128xf32>
    %141 = math.log %88 : vector<16x128xf32>
    %142 = arith.mulf %140, %141 : vector<16x128xf32>
    %cst_50 = arith.constant 0.918938517 : f32
    %143 = vector.broadcast %cst_50 : f32 to vector<16x128xf32>
    %144 = arith.addf %143, %142 : vector<16x128xf32>
    %145 = arith.subf %144, %88 : vector<16x128xf32>
    %146 = arith.divf %113, %138 : vector<16x128xf32>
    %147 = math.log %146 : vector<16x128xf32>
    %148 = arith.addf %145, %147 : vector<16x128xf32>
    %149 = arith.subf %82, %148 : vector<16x128xf32>
    %150 = vector.extract_strided_slice %149 {offsets = [0, 0], sizes = [8, 128], strides = [1, 1]} : vector<16x128xf32> to vector<8x128xf32>
    %151 = vector.extract_strided_slice %149 {offsets = [8, 0], sizes = [8, 128], strides = [1, 1]} : vector<16x128xf32> to vector<8x128xf32>
    %152 = arith.addf %150, %151 : vector<8x128xf32>
    %c0_51 = arith.constant 0 : index
    %c0_52 = arith.constant 0 : index
    %153 = vector.load %arg4[%c0_51, %c0_52] : memref<8x128xf32, #tpu.memory_space<vmem>>, vector<8x128xf32>
    tpu.vector_store %arg4[%c0_51, %c0_52], %152 {strides = array<i32>} : memref<8x128xf32, #tpu.memory_space<vmem>>, vector<8x128xf32>,
    %c0_i32 = arith.constant 0 : i32
    %154 = arith.cmpi eq, %arg0, %c0_i32 : i32
    %155 = arith.extui %154 : i1 to i32
    %c0_i32_53 = arith.constant 0 : i32
    %156 = arith.cmpi ne, %155, %c0_i32_53 : i32
    scf.if %156 {
      %cst_54 = arith.constant 9.99999993E-9 : f32
      %157 = vector.broadcast %cst_54 : f32 to vector<1x128xf32>
      %158 = arith.addf %2, %157 : vector<1x128xf32>
      %159 = math.log %158 : vector<1x128xf32>
      %160 = arith.mulf %2, %159 : vector<1x128xf32>
      %cst_55 = arith.constant 1.000000e+00 : f32
      %161 = vector.broadcast %cst_55 : f32 to vector<1x128xf32>
      %162 = arith.subf %2, %161 : vector<1x128xf32>
      %cst_56 = arith.constant 7.500000e+00 : f32
      %163 = vector.broadcast %cst_56 : f32 to vector<1x128xf32>
      %164 = arith.addf %162, %163 : vector<1x128xf32>
      %cst_57 = arith.constant 1.000000e+00 : f32
      %165 = vector.broadcast %cst_57 : f32 to vector<1x128xf32>
      %166 = arith.mulf %165, %162 : vector<1x128xf32>
      %cst_58 = arith.constant 60.4583321 : f32
      %167 = vector.broadcast %cst_58 : f32 to vector<1x128xf32>
      %168 = arith.addf %166, %167 : vector<1x128xf32>
      %169 = arith.mulf %168, %162 : vector<1x128xf32>
      %cst_59 = arith.constant 1599.04248 : f32
      %170 = vector.broadcast %cst_59 : f32 to vector<1x128xf32>
      %171 = arith.addf %169, %170 : vector<1x128xf32>
      %172 = arith.mulf %171, %162 : vector<1x128xf32>
      %cst_60 = arith.constant 24165.5098 : f32
      %173 = vector.broadcast %cst_60 : f32 to vector<1x128xf32>
      %174 = arith.addf %172, %173 : vector<1x128xf32>
      %175 = arith.mulf %174, %162 : vector<1x128xf32>
      %cst_61 = arith.constant 228235.219 : f32
      %176 = vector.broadcast %cst_61 : f32 to vector<1x128xf32>
      %177 = arith.addf %175, %176 : vector<1x128xf32>
      %178 = arith.mulf %177, %162 : vector<1x128xf32>
      %cst_62 = arith.constant 1379496.25 : f32
      %179 = vector.broadcast %cst_62 : f32 to vector<1x128xf32>
      %180 = arith.addf %178, %179 : vector<1x128xf32>
      %181 = arith.mulf %180, %162 : vector<1x128xf32>
      %cst_63 = arith.constant 0x4A9F05EA : f32
      %182 = vector.broadcast %cst_63 : f32 to vector<1x128xf32>
      %183 = arith.addf %181, %182 : vector<1x128xf32>
      %184 = arith.mulf %183, %162 : vector<1x128xf32>
      %cst_64 = arith.constant 0x4B2B9D51 : f32
      %185 = vector.broadcast %cst_64 : f32 to vector<1x128xf32>
      %186 = arith.addf %184, %185 : vector<1x128xf32>
      %187 = arith.mulf %186, %162 : vector<1x128xf32>
      %cst_65 = arith.constant 0x4B220ADA : f32
      %188 = vector.broadcast %cst_65 : f32 to vector<1x128xf32>
      %189 = arith.addf %187, %188 : vector<1x128xf32>
      %cst_66 = arith.constant 1.000000e+00 : f32
      %190 = vector.broadcast %cst_66 : f32 to vector<1x128xf32>
      %191 = arith.mulf %190, %162 : vector<1x128xf32>
      %cst_67 = arith.constant 3.600000e+01 : f32
      %192 = vector.broadcast %cst_67 : f32 to vector<1x128xf32>
      %193 = arith.addf %191, %192 : vector<1x128xf32>
      %194 = arith.mulf %193, %162 : vector<1x128xf32>
      %cst_68 = arith.constant 5.460000e+02 : f32
      %195 = vector.broadcast %cst_68 : f32 to vector<1x128xf32>
      %196 = arith.addf %194, %195 : vector<1x128xf32>
      %197 = arith.mulf %196, %162 : vector<1x128xf32>
      %cst_69 = arith.constant 4.536000e+03 : f32
      %198 = vector.broadcast %cst_69 : f32 to vector<1x128xf32>
      %199 = arith.addf %197, %198 : vector<1x128xf32>
      %200 = arith.mulf %199, %162 : vector<1x128xf32>
      %cst_70 = arith.constant 2.244900e+04 : f32
      %201 = vector.broadcast %cst_70 : f32 to vector<1x128xf32>
      %202 = arith.addf %200, %201 : vector<1x128xf32>
      %203 = arith.mulf %202, %162 : vector<1x128xf32>
      %cst_71 = arith.constant 6.728400e+04 : f32
      %204 = vector.broadcast %cst_71 : f32 to vector<1x128xf32>
      %205 = arith.addf %203, %204 : vector<1x128xf32>
      %206 = arith.mulf %205, %162 : vector<1x128xf32>
      %cst_72 = arith.constant 1.181240e+05 : f32
      %207 = vector.broadcast %cst_72 : f32 to vector<1x128xf32>
      %208 = arith.addf %206, %207 : vector<1x128xf32>
      %209 = arith.mulf %208, %162 : vector<1x128xf32>
      %cst_73 = arith.constant 1.095840e+05 : f32
      %210 = vector.broadcast %cst_73 : f32 to vector<1x128xf32>
      %211 = arith.addf %209, %210 : vector<1x128xf32>
      %212 = arith.mulf %211, %162 : vector<1x128xf32>
      %cst_74 = arith.constant 4.032000e+04 : f32
      %213 = vector.broadcast %cst_74 : f32 to vector<1x128xf32>
      %214 = arith.addf %212, %213 : vector<1x128xf32>
      %cst_75 = arith.constant 5.000000e-01 : f32
      %215 = vector.broadcast %cst_75 : f32 to vector<1x128xf32>
      %216 = arith.addf %162, %215 : vector<1x128xf32>
      %217 = math.log %164 : vector<1x128xf32>
      %218 = arith.mulf %216, %217 : vector<1x128xf32>
      %cst_76 = arith.constant 0.918938517 : f32
      %219 = vector.broadcast %cst_76 : f32 to vector<1x128xf32>
      %220 = arith.addf %219, %218 : vector<1x128xf32>
      %221 = arith.subf %220, %164 : vector<1x128xf32>
      %222 = arith.divf %189, %214 : vector<1x128xf32>
      %223 = math.log %222 : vector<1x128xf32>
      %224 = arith.addf %221, %223 : vector<1x128xf32>
      %225 = arith.subf %160, %224 : vector<1x128xf32>
      %c0_77 = arith.constant 0 : index
      %c0_78 = arith.constant 0 : index
      %226 = vector.load %arg4[%c0_77, %c0_78] : memref<8x128xf32, #tpu.memory_space<vmem>>, vector<8x128xf32>
      %cst_79 = arith.constant 2.000000e+00 : f32
      %227 = vector.broadcast %cst_79 : f32 to vector<1x128xf32>
      %228 = arith.mulf %227, %225 : vector<1x128xf32>
      %229 = vector.broadcast %228 : vector<1x128xf32> to vector<8x128xf32>
      %230 = arith.addf %226, %229 : vector<8x128xf32>
      %c0_80 = arith.constant 0 : index
      %c0_81 = arith.constant 0 : index
      %231 = vector.load %arg4[%c0_80, %c0_81] : memref<8x128xf32, #tpu.memory_space<vmem>>, vector<8x128xf32>
      tpu.vector_store %arg4[%c0_80, %c0_81], %230 {strides = array<i32>} : memref<8x128xf32, #tpu.memory_space<vmem>>, vector<8x128xf32>,
    } else {
    }
    return
  }
  func.func @transform_0(%arg0: i32) -> (i32, i32) {
    %c0_i32 = arith.constant 0 : i32
    %c0_i32_0 = arith.constant 0 : i32
    return %arg0, %c0_i32 : i32, i32
  }
  func.func @transform_1(%arg0: i32) -> (i32, i32) {
    %c0_i32 = arith.constant 0 : i32
    %c0_i32_0 = arith.constant 0 : i32
    return %arg0, %c0_i32 : i32, i32
  }
  func.func @transform_2(%arg0: i32) -> (i32, i32) {
    %c0_i32 = arith.constant 0 : i32
    %c0_i32_0 = arith.constant 0 : i32
    %c0_i32_1 = arith.constant 0 : i32
    return %c0_i32, %c0_i32_0 : i32, i32
  }
  func.func @transform_3(%arg0: i32) -> (i32, i32) {
    %c0_i32 = arith.constant 0 : i32
    %c0_i32_0 = arith.constant 0 : i32
    return %arg0, %c0_i32 : i32, i32
  }
}

</mosaic_0001>

<bundles_post_ra>
// kernel: tpu_custom_call.1
= control target key start
LH: loop header
LB: loop body
LE: loop exit
PB: predicated region body
PF: predicated region fallthrough
CT: control target
= control target key end

     0   :  { %8 = vsyncpa [#allocation3], 0  ;;  %s676_s0 = inlined_call_operand.hbm [shape: f32[16,128], index: 0, kind: input, shape index: {}]   ;;  %s677_s1 = inlined_call_operand.hbm [shape: f32[16,128], index: 1, kind: input, shape index: {}]   ;;  %s678_s2 = inlined_call_operand.vmem [shape: f32[1,128], index: 2, kind: input, shape index: {}]   ;;  %s679_s3 = inlined_call_operand.hbm [shape: f32[8,128], index: 3, kind: output, shape index: {}]  }
   0x1   :  { %9 = vsyncpa [#allocation6], 0 }
   0x2   :  { %10 = vsyncpa [#allocation4], 0  ;;  %s458_s12 = smov [#allocation2]   ;;  %s386_s16 = scalar_lea.hbm %s676_s0, 256 }
   0x3   :  { %s16_s13 = sshll.u32 %s458_s12, 4  ;;  %p387_p0 = scmp.ne.s32.totalorder %s676_s0, %s386_s16  ;;  %s17_s13 = int_to_ptr.vmem [resolvable:$true] %s16_s13 }
   0x4   :  { %p390_p1 = scmp.lt.u32.totalorder %s386_s16, %s676_s0 }
   0x6   :  { %p392_p2 = pnand %p390_p1, %p387_p0 }
   0x8   :  { %395 = shalt.err (!%p392_p2)
}
   0x9   :  { %s396_s21 = scalar_lea.vmem %s17_s13, 256  ;;  %p401_p4 = scmp.lt.s32.totalorder %s17_s13, %s17_s13 }
   0xa   :  { %p397_p3 = scmp.ne.s32.totalorder %s17_s13, %s396_s21  ;;  %p402_p5 = scmp.lt.s32.totalorder %s396_s21, %s396_s21 }
   0xc   :  { %p403_p6 = por %p402_p5, %p401_p4 }
   0xe   :  { %p404_p7 = pnand %p403_p6, %p397_p3 }
  0x10   :  { %407 = shalt.err (!%p404_p7)
}
  0x11   :  { %s459_s22 = smov 128   ;;  %s460_s23 = smov 8  }
  0x12   :  { %22 = dma.hbm_to_vmem [thread:$0]  %s676_s0, 256, %s17_s13, [#allocation3], %s459_s22, %s459_s22, %s460_s23  }
  0x13   :  { %s461_s26 = smov [#allocation5]   ;;  %s408_s30 = scalar_lea.hbm %s677_s1, 256 }
  0x14   :  { %s28_s27 = sshll.u32 %s461_s26, 4  ;;  %p409_p8 = scmp.ne.s32.totalorder %s677_s1, %s408_s30  ;;  %s29_s27 = int_to_ptr.vmem [resolvable:$true] %s28_s27 }
  0x15   :  { %p412_p9 = scmp.lt.u32.totalorder %s408_s30, %s677_s1 }
  0x17   :  { %p414_p10 = pnand %p412_p9, %p409_p8 }
  0x19   :  { %417 = shalt.err (!%p414_p10)
}
  0x1a   :  { %s418_s8 = scalar_lea.vmem %s29_s27, 256  ;;  %p423_p12 = scmp.lt.s32.totalorder %s29_s27, %s29_s27 }
  0x1b   :  { %p419_p11 = scmp.ne.s32.totalorder %s29_s27, %s418_s8  ;;  %p424_p13 = scmp.lt.s32.totalorder %s418_s8, %s418_s8 }
  0x1d   :  { %p425_p0 = por %p424_p13, %p423_p12 }
  0x1f   :  { %p426_p1 = pnand %p425_p0, %p419_p11 }
  0x21   :  { %429 = shalt.err (!%p426_p1)
}
  0x22   :  { %34 = dma.hbm_to_vmem [thread:$0]  %s677_s1, 256, %s29_s27, [#allocation6], %s459_s22, %s459_s22, %s460_s23  }
  0x23   :  { %452 = dma.done.wait [#allocation3], 256  }
  0x24   :  { %453 = vsyncadd [#allocation3], 4294967040 }
  0x25   :  { %454 = dma.done.wait [#allocation6], 256  }
  0x26   :  { %455 = vsyncadd [#allocation6], 4294967040  ;;  %v49_v0 = vlaneseq  ;;  %v510_v3 = vld [vmem:[#allocation2] sm:$0xff]  ;;  %v517_v5 = vld [vmem:[#allocation2 + $0x8] sm:$0xff]  ;;  %s462_s1 = smov [#allocation7]  }
  0x27   :  { %v515_v4 = vld [vmem:[%s678_s2] sm:$0x1]  ;;  %v166_v10 = vadd.f32 1.0, %v510_v3  ;;  %v167_v12 = vadd.f32 1.0, %v517_v5  ;;  %s326_s2 = sshll.u32 %s462_s1, 4  ;;  %s327_s2 = int_to_ptr.vmem [resolvable:$true] %s326_s2 }
  0x28   :  { %v507_v1 = vshrl.u32 %v49_v0, 7  ;;  %s430_s12 = scalar_lea.vmem %s327_s2, 128  ;;  %p435_p3 = scmp.lt.s32.totalorder %s327_s2, %s327_s2 }
  0x29   :  { %v539_v18 = vadd.f32 -1.0, %v166_v10  ;;  %v543_v21 = vadd.f32 -1.0, %v167_v12  ;;  %p431_p2 = scmp.ne.s32.totalorder %s327_s2, %s430_s12  ;;  %p436_p4 = scmp.lt.s32.totalorder %s430_s12, %s430_s12 }
  0x2a   :  { %v51_v2 = vsub.s32 0, %v507_v1 }
  0x2b   :  { %v172_v23 = vadd.f32 60.458332, %v539_v18  ;;  %v173_v26 = vadd.f32 60.458332, %v543_v21  ;;  %v202_v36 = vadd.f32 36.0, %v539_v18  ;;  %v203_v47 = vadd.f32 36.0, %v543_v21  ;;  %p437_p5 = por %p436_p4, %p435_p3 }
  0x2c   :  { %v522_v6 = vrot.slane %v515_v4, %v51_v2 }
  0x2d   :  { %v174_v31 = vmul.f32 %v539_v18, %v172_v23  ;;  %v175_v34 = vmul.f32 %v543_v21, %v173_v26  ;;  %v204_v45 = vmul.f32 %v539_v18, %v202_v36  ;;  %v205_v55 = vmul.f32 %v543_v21, %v203_v47  ;;  %p438_p6 = pnand %p437_p5, %p431_p2 }
  0x2e   :  { %v76_v7 = vadd.f32 %v522_v6, %v510_v3  ;;  %v77_v8 = vadd.f32 %v522_v6, %v517_v5 }
  0x2f   :  { %v176_v40 = vadd.f32 1599.0425, %v174_v31  ;;  %v177_v43 = vadd.f32 1599.0425, %v175_v34  ;;  %v206_v53 = vadd.f32 546.0, %v204_v45  ;;  %v207_v63 = vadd.f32 546.0, %v205_v55 }
  0x30   :  { %v528_v9 = vadd.f32 -1.0, %v76_v7  ;;  %v531_v11 = vadd.f32 -1.0, %v77_v8 }
  0x31   :  { %v178_v49 = vmul.f32 %v539_v18, %v176_v40  ;;  %v179_v51 = vmul.f32 %v543_v21, %v177_v43  ;;  %v208_v61 = vmul.f32 %v539_v18, %v206_v53  ;;  %v209_v12 = vmul.f32 %v543_v21, %v207_v63 }
  0x32   :  { %v82_v13 = vadd.f32 60.458332, %v528_v9  ;;  %v112_v14 = vadd.f32 36.0, %v528_v9  ;;  %v83_v15 = vadd.f32 60.458332, %v531_v11  ;;  %v113_v16 = vadd.f32 36.0, %v531_v11 }
  0x33   :  { %v180_v57 = vadd.f32 24165.51, %v178_v49  ;;  %v181_v59 = vadd.f32 24165.51, %v179_v51 }
  0x34   :  { %v114_v17 = vmul.f32 %v528_v9, %v112_v14  ;;  %v84_v19 = vmul.f32 %v528_v9, %v82_v13  ;;  %v115_v20 = vmul.f32 %v531_v11, %v113_v16  ;;  %v85_v24 = vmul.f32 %v531_v11, %v83_v15 }
  0x35   :  { %v182_v7 = vmul.f32 %v539_v18, %v180_v57  ;;  %v183_v10 = vmul.f32 %v543_v21, %v181_v59  ;;  %v210_v14 = vadd.f32 4536.0, %v208_v61  ;;  %v211_v16 = vadd.f32 4536.0, %v209_v12 }
  0x36   :  { %v116_v22 = vadd.f32 546.0, %v114_v17  ;;  %v117_v25 = vadd.f32 546.0, %v115_v20  ;;  %v86_v28 = vadd.f32 1599.0425, %v84_v19  ;;  %v87_v32 = vadd.f32 1599.0425, %v85_v24 }
  0x37   :  { %v184_v19 = vadd.f32 228235.22, %v182_v7  ;;  %v212_v20 = vmul.f32 %v539_v18, %v210_v14  ;;  %v185_v23 = vadd.f32 228235.22, %v183_v10  ;;  %v213_v24 = vmul.f32 %v543_v21, %v211_v16 }
  0x38   :  { %v118_v27 = vmul.f32 %v528_v9, %v116_v22  ;;  %v119_v29 = vmul.f32 %v531_v11, %v117_v25  ;;  %v88_v37 = vmul.f32 %v528_v9, %v86_v28  ;;  %v89_v41 = vmul.f32 %v531_v11, %v87_v32  ;;  %v45_v28 = vld [vmem:[#allocation5] sm:$0xff] }
  0x39   :  { %v214_v26 = vadd.f32 22449.0, %v212_v20  ;;  %v62_v31 = vadd.f32 1e-08, %v45_v28  ;;  %v187_v36 = vmul.f32 %v543_v21, %v185_v23 }
  0x3a   :  { %v120_v30 = vadd.f32 4536.0, %v118_v27  ;;  %v121_v33 = vadd.f32 4536.0, %v119_v29  ;;  %v90_v46 = vadd.f32 24165.51, %v88_v37  ;;  %v91_v50 = vadd.f32 24165.51, %v89_v41 }
  0x3b   :  { %v578_v27 = vadd.f32 -1.0, %v515_v4  ;;  %v216_v34 = vmul.f32 %v539_v18, %v214_v26  ;;  %346 = vlog2.f32 %v62_v31 }
  0x3c   :  { %v122_v35 = vmul.f32 %v528_v9, %v120_v30  ;;  %v123_v38 = vmul.f32 %v531_v11, %v121_v33  ;;  %v92_v54 = vmul.f32 %v528_v9, %v90_v46  ;;  %v93_v58 = vmul.f32 %v531_v11, %v91_v50 }
  0x3d   :  { %v215_v30 = vadd.f32 22449.0, %v213_v24  ;;  %v186_v33 = vmul.f32 %v539_v18, %v184_v19  ;;  %v218_v41 = vadd.f32 67284.0, %v216_v34 }
  0x3e   :  { %v124_v39 = vadd.f32 22449.0, %v122_v35  ;;  %v125_v42 = vadd.f32 22449.0, %v123_v38  ;;  %v94_v62 = vadd.f32 228235.22, %v92_v54 }
  0x3f   :  { %v95_v8 = vadd.f32 228235.22, %v93_v58  ;;  %v217_v37 = vmul.f32 %v543_v21, %v215_v30  ;;  %v268_v38 = vadd.f32 60.458332, %v578_v27  ;;  %v220_v49 = vmul.f32 %v539_v18, %v218_v41 }
  0x40   :  { %v126_v44 = vmul.f32 %v528_v9, %v124_v39  ;;  %v127_v48 = vmul.f32 %v531_v11, %v125_v42  ;;  %v96_v15 = vmul.f32 %v528_v9, %v94_v62  ;;  %v46_v39 = vld [vmem:[#allocation5 + $0x8] sm:$0xff]  ;;  %v283_v42 = vadd.f32 36.0, %v578_v27 }
  0x41   :  { %v97_v22 = vmul.f32 %v531_v11, %v95_v8  ;;  %v63_v43 = vadd.f32 1e-08, %v46_v39  ;;  %v219_v45 = vadd.f32 67284.0, %v217_v37  ;;  %v269_v46 = vmul.f32 %v578_v27, %v268_v38 }
  0x42   :  { %v128_v52 = vadd.f32 67284.0, %v126_v44  ;;  %v129_v56 = vadd.f32 67284.0, %v127_v48  ;;  %v98_v29 = vadd.f32 1379496.3, %v96_v15  ;;  %v284_v50 = vmul.f32 %v578_v27, %v283_v42 }
  0x43   :  { %v99_v35 = vadd.f32 1379496.3, %v97_v22  ;;  %v188_v48 = vadd.f32 1379496.3, %v186_v33  ;;  %v221_v53 = vmul.f32 %v543_v21, %v219_v45  ;;  %v270_v54 = vadd.f32 1599.0425, %v269_v46 }
  0x44   :  { %v130_v60 = vmul.f32 %v528_v9, %v128_v52  ;;  %v131_v0 = vmul.f32 %v531_v11, %v129_v56  ;;  %v100_v44 = vmul.f32 %v528_v9, %v98_v29  ;;  %v189_v52 = vadd.f32 1379496.3, %v187_v36 }
  0x45   :  { %v101_v51 = vmul.f32 %v531_v11, %v99_v35  ;;  %v222_v56 = vadd.f32 118124.0, %v220_v49  ;;  %v285_v57 = vadd.f32 546.0, %v284_v50  ;;  %v54_v58 = vadd.f32 %v522_v6, %v45_v28  ;;  %v613_v38 = vpop.eup %346 }
  0x46   :  { %v132_v13 = vadd.f32 118124.0, %v130_v60  ;;  %v133_v17 = vadd.f32 118124.0, %v131_v0  ;;  %v102_v59 = vadd.f32 5210869.0, %v100_v44  ;;  %v271_v61 = vmul.f32 %v578_v27, %v270_v54 }
  0x47   :  { %v223_v60 = vadd.f32 118124.0, %v221_v53  ;;  %v190_v63 = vmul.f32 %v539_v18, %v188_v48  ;;  %v224_v0 = vmul.f32 %v539_v18, %v222_v56  ;;  %v286_v7 = vmul.f32 %v578_v27, %v285_v57 }
  0x48   :  { %v134_v25 = vmul.f32 %v528_v9, %v132_v13  ;;  %v135_v32 = vmul.f32 %v531_v11, %v133_v17  ;;  %v103_v8 = vadd.f32 5210869.0, %v101_v51  ;;  %v191_v10 = vmul.f32 %v543_v21, %v189_v52 }
  0x49   :  { %v225_v12 = vmul.f32 %v543_v21, %v223_v60  ;;  %v272_v13 = vadd.f32 24165.51, %v271_v61  ;;  %348 = vlog2.f32 %v63_v43  ;;  %v226_v15 = vadd.f32 109584.0, %v224_v0 }
  0x4a   :  { %v136_v40 = vadd.f32 109584.0, %v134_v25  ;;  %v137_v47 = vadd.f32 109584.0, %v135_v32  ;;  %v287_v16 = vadd.f32 4536.0, %v286_v7  ;;  %v104_v19 = vmul.f32 %v528_v9, %v102_v59 }
  0x4b   :  { %v56_v17 = vadd.f32 1e-08, %v54_v58  ;;  %v227_v20 = vadd.f32 109584.0, %v225_v12  ;;  %v273_v22 = vmul.f32 %v578_v27, %v272_v13  ;;  %v192_v24 = vadd.f32 5210869.0, %v190_v63 }
  0x4c   :  { %v138_v55 = vmul.f32 %v528_v9, %v136_v40  ;;  %v139_v62 = vmul.f32 %v531_v11, %v137_v47  ;;  %v228_v25 = vmul.f32 %v539_v18, %v226_v15  ;;  %v288_v26 = vmul.f32 %v578_v27, %v287_v16 }
  0x4d   :  { %v105_v28 = vmul.f32 %v531_v11, %v103_v8  ;;  %v193_v29 = vadd.f32 5210869.0, %v191_v10  ;;  %v229_v30 = vmul.f32 %v543_v21, %v227_v20  ;;  %v274_v31 = vadd.f32 228235.22, %v273_v22 }
  0x4e   :  { %v140_v14 = vadd.f32 40320.0, %v138_v55  ;;  %v141_v23 = vadd.f32 40320.0, %v139_v62  ;;  %v55_v32 = vadd.f32 %v522_v6, %v46_v39  ;;  %v610_v33 = vadd.f32 7.5, %v528_v9 }
  0x4f   :  { %v289_v34 = vadd.f32 22449.0, %v288_v26  ;;  %v106_v35 = vadd.f32 11246929.0, %v104_v19  ;;  %v230_v36 = vadd.f32 40320.0, %v228_v25  ;;  %v275_v37 = vmul.f32 %v578_v27, %v274_v31 }
  0x50   :  { %350 = vrcp.f32 %v140_v14  ;;  %v194_v40 = vmul.f32 %v539_v18, %v192_v24  ;;  %v231_v41 = vadd.f32 40320.0, %v229_v30  ;;  %v618_v39 = vadd.f32 7.5, %v531_v11 }
  0x51   :  { %352 = vlog2.f32 %v56_v17  ;;  %v290_v42 = vmul.f32 %v578_v27, %v289_v34  ;;  %v107_v43 = vadd.f32 11246929.0, %v105_v28  ;;  %v195_v44 = vmul.f32 %v543_v21, %v193_v29 }
  0x52   :  { %354 = vrcp.f32 %v141_v23  ;;  %v276_v45 = vadd.f32 1379496.3, %v275_v37  ;;  %v57_v46 = vadd.f32 1e-08, %v55_v32  ;;  %v108_v48 = vmul.f32 %v528_v9, %v106_v35 }
  0x53   :  { %356 = vlog2.f32 %v610_v33  ;;  %v291_v47 = vadd.f32 67284.0, %v290_v42  ;;  %v624_v49 = vadd.f32 7.5, %v539_v18  ;;  %v349_v51 = vpop.eup %348  ;;  %v628_v52 = vadd.f32 7.5, %v543_v21 }
  0x54   :  { %358 = vrcp.f32 %v230_v36  ;;  %v277_v50 = vmul.f32 %v578_v27, %v276_v45  ;;  %v196_v53 = vadd.f32 11246929.0, %v194_v40  ;;  %v109_v55 = vmul.f32 %v531_v11, %v107_v43 }
  0x55   :  { %360 = vrcp.f32 %v231_v41  ;;  %v292_v54 = vmul.f32 %v578_v27, %v291_v47  ;;  %v197_v56 = vadd.f32 11246929.0, %v195_v44  ;;  %v110_v58 = vadd.f32 10619610.0, %v108_v48 }
  0x56   :  { %362 = vlog2.f32 %v618_v39  ;;  %v278_v59 = vadd.f32 5210869.0, %v277_v50  ;;  %v198_v61 = vmul.f32 %v539_v18, %v196_v53  ;;  %v637_v62 = vadd.f32 7.5, %v578_v27 }
  0x57   :  { %364 = vlog2.f32 %v57_v46  ;;  %v293_v57 = vadd.f32 118124.0, %v292_v54  ;;  %v111_v7 = vadd.f32 10619610.0, %v109_v55  ;;  %v199_v8 = vmul.f32 %v543_v21, %v197_v56 }
  0x58   :  { %366 = vlog2.f32 %v624_v49  ;;  %v279_v14 = vmul.f32 %v578_v27, %v278_v59  ;;  %v200_v16 = vadd.f32 10619610.0, %v198_v61  ;;  %v142_v34 = vadd.f32 0.5, %v528_v9 }
  0x59   :  { %368 = vlog2.f32 %v628_v52  ;;  %v294_v63 = vmul.f32 %v578_v27, %v293_v57  ;;  %v201_v22 = vadd.f32 10619610.0, %v199_v8  ;;  %v143_v35 = vadd.f32 0.5, %v531_v11 }
  0x5a   :  { %v351_v60 = vpop.eup %350  ;;  %370 = vlog2.f32 %v637_v62  ;;  %v280_v26 = vadd.f32 11246929.0, %v279_v14  ;;  %v65_v40 = vmul.f32 0.6931472, %v613_v38  ;;  %v67_v41 = vmul.f32 0.6931472, %v349_v51 }
  0x5b   :  { %v353_v0 = vpop.eup %352  ;;  %v295_v12 = vadd.f32 109584.0, %v294_v63  ;;  %v155_v13 = vmul.f32 %v351_v60, %v110_v58  ;;  %v262_v42 = vadd.f32 1e-08, %v515_v4  ;;  %v232_v46 = vadd.f32 0.5, %v539_v18 }
  0x5c   :  { %v355_v10 = vpop.eup %354  ;;  %v281_v43 = vmul.f32 %v578_v27, %v280_v26  ;;  %v59_v44 = vmul.f32 0.6931472, %v353_v0  ;;  %v233_v47 = vadd.f32 0.5, %v543_v21  ;;  %v298_v58 = vadd.f32 0.5, %v578_v27 }
  0x5d   :  { %v357_v15 = vpop.eup %356  ;;  %v296_v17 = vmul.f32 %v578_v27, %v295_v12  ;;  %v157_v20 = vmul.f32 %v355_v10, %v111_v7  ;;  %372 = vlog2.f32 %v155_v13 }
  0x5e   :  { %v359_v19 = vpop.eup %358  ;;  %v145_v36 = vmul.f32 0.6931472, %v357_v15  ;;  %v282_v38 = vadd.f32 10619610.0, %v281_v43  ;;  %v68_v51 = vsub.f32 %v65_v40, %v59_v44  ;;  %v72_v8 = vmul.f32 %v59_v44, %v522_v6 }
  0x5f   :  { %v361_v23 = vpop.eup %360  ;;  %v297_v24 = vadd.f32 40320.0, %v296_v17  ;;  %v245_v29 = vmul.f32 %v359_v19, %v200_v16 }
  0x60   :  { %v363_v25 = vpop.eup %362  ;;  %v247_v31 = vmul.f32 %v361_v23, %v201_v22  ;;  %v148_v50 = vmul.f32 %v145_v36, %v142_v34  ;;  %v70_v0 = vmul.f32 %v68_v51, %v510_v3 }
  0x61   :  { %v365_v28 = vpop.eup %364  ;;  %374 = vrcp.f32 %v297_v24  ;;  %v147_v37 = vmul.f32 0.6931472, %v363_v25 }
  0x62   :  { %v367_v30 = vpop.eup %366  ;;  %376 = vlog2.f32 %v157_v20  ;;  %v61_v45 = vmul.f32 0.6931472, %v365_v28  ;;  %v150_v60 = vadd.f32 0.9189385, %v148_v50  ;;  %v74_v22 = vsub.f32 %v70_v0, %v72_v8 }
  0x63   :  { %v369_v32 = vpop.eup %368  ;;  %378 = vlog2.f32 %v245_v29  ;;  %v235_v48 = vmul.f32 0.6931472, %v367_v30  ;;  %v149_v53 = vmul.f32 %v147_v37, %v143_v35 }
  0x64   :  { %v237_v9 = vmul.f32 0.6931472, %v369_v32  ;;  %380 = vlog2.f32 %v247_v31  ;;  %v371_v11 = vpop.eup %370  ;;  %v69_v54 = vsub.f32 %v67_v41, %v61_v45  ;;  %v73_v10 = vmul.f32 %v61_v45, %v522_v6 }
  0x65   :  { %382 = vlog2.f32 %v262_v42  ;;  %v238_v56 = vmul.f32 %v235_v48, %v232_v46  ;;  %v300_v59 = vmul.f32 0.6931472, %v371_v11  ;;  %v151_v61 = vadd.f32 0.9189385, %v149_v53 }
  0x66   :  { %v239_v57 = vmul.f32 %v237_v9, %v233_v47  ;;  %v71_v7 = vmul.f32 %v69_v54, %v517_v5  ;;  %v152_v27 = vsub.f32 %v150_v60, %v610_v33 }
  0x67   :  { %v373_v55 = vpop.eup %372  ;;  %v240_v12 = vadd.f32 0.9189385, %v238_v56  ;;  %v301_v14 = vmul.f32 %v300_v59, %v298_v58  ;;  %v153_v16 = vsub.f32 %v151_v61, %v618_v39 }
  0x68   :  { %v241_v13 = vadd.f32 0.9189385, %v239_v57  ;;  %v159_v17 = vmul.f32 0.6931472, %v373_v55  ;;  %v75_v23 = vsub.f32 %v71_v7, %v73_v10 }
  0x69   :  { %v242_v5 = vsub.f32 %v240_v12, %v624_v49  ;;  %v302_v6 = vadd.f32 0.9189385, %v301_v14 }
  0x6a   :  { %v243_v24 = vsub.f32 %v241_v13, %v628_v52  ;;  %v162_v25 = vadd.f32 %v159_v17, %v152_v27 }
  0x6b   :  { %v375_v18 = vpop.eup %374  ;;  %v303_v33 = vsub.f32 %v302_v6, %v637_v62 }
  0x6c   :  { %v377_v21 = vpop.eup %376  ;;  %v305_v63 = vmul.f32 %v375_v18, %v282_v38  ;;  %v164_v31 = vadd.f32 %v162_v25, %v74_v22 }
  0x6d   :  { %v379_v15 = vpop.eup %378  ;;  %v161_v19 = vmul.f32 0.6931472, %v377_v21 }
  0x6e   :  { %384 = vlog2.f32 %v305_v63  ;;  %v381_v20 = vpop.eup %380  ;;  %v249_v28 = vmul.f32 0.6931472, %v379_v15 }
  0x6f   :  { %v383_v3 = vpop.eup %382  ;;  %v163_v26 = vadd.f32 %v161_v19, %v153_v16  ;;  %v251_v29 = vmul.f32 0.6931472, %v381_v20 }
  0x70   :  { %v264_v30 = vmul.f32 0.6931472, %v383_v3  ;;  %v252_v32 = vadd.f32 %v249_v28, %v242_v5 }
  0x71   :  { %v165_v39 = vadd.f32 %v163_v26, %v75_v23  ;;  %v253_v34 = vadd.f32 %v251_v29, %v243_v24 }
  0x72   :  { %v265_v36 = vmul.f32 %v264_v30, %v515_v4  ;;  %v254_v40 = vsub.f32 %v164_v31, %v252_v32 }
  0x73   :  { %v255_v49 = vsub.f32 %v165_v39, %v253_v34 }
  0x75   :  { %v256_v42 = vadd.f32 %v255_v49, %v254_v40 }
  0x78   :  { %v385_v35 = vpop.eup %384 }
  0x79   :  { %v307_v37 = vmul.f32 0.6931472, %v385_v35 }
  0x7b   :  { %v308_v41 = vadd.f32 %v307_v37, %v303_v33 }
  0x7d   :  { %v309_v52 = vsub.f32 %v265_v36, %v308_v41 }
  0x7f   :  { %v311_v43 = vmul.f32 2.0, %v309_v52 }
  0x81   :  { %v316_v44 = vrot.slane %v311_v43, %v51_v2 }
  0x83   :  { %v318_v62 = vadd.f32 %v316_v44, %v256_v42 }
  0x85   :  { %319 = vst [vmem:[#allocation7] sm:$0xff] %v318_v62 }
  0x86   :  { %441 = shalt.err (!%p438_p6)
}
  0x87   :  { %s442_s15 = scalar_lea.hbm %s679_s3, 128 }
  0x88   :  { %p443_p7 = scmp.ne.s32.totalorder %s679_s3, %s442_s15  ;;  %p446_p8 = scmp.lt.u32.totalorder %s442_s15, %s679_s3 }
  0x8a   :  { %p448_p9 = pnand %p446_p8, %p443_p7 }
  0x8c   :  { %451 = shalt.err (!%p448_p9)
}
  0x8d   :  { %329 = dma.vmem_to_hbm [thread:$0]  %s327_s2, 128, %s679_s3, [#allocation4]  }
  0x8e   :  { %456 = dma.done.wait [#allocation4], 128  }
  0x8f   :  { %457 = vsyncadd [#allocation4], 4294967168 }
  0x90   :  { %333 = vsyncpa [#allocation3], 1 }
  0x91   :  { %334 = vsyncpa [#allocation6], 1 }
  0x92   :  { %335 = vsyncpa [#allocation4], 1 }

</bundles_post_ra>
